<compile_context>
chip_gen: v7x
topology: tpu7x:2x2x1
jax: 0.10.0
libtpu: 0.0.40
codegen_flags: <defaults>
</compile_context>

<pallas_src>
import numpy as np
import jax
import jax.numpy as jnp
from jax.experimental import pallas as pl
from jax.experimental.pallas import tpu as pltpu

# ----------------- static configuration (small, module-consistent) -----------
B = 2
DIM = 4
DIM_OUT = 4            # default(dim_out, dim)
O4 = DIM_OUT * 4       # conv produces dim_out * 4 channels (pre-shuffle)
T, H, W = 8, 16, 16
THW = T * H * W        # 2048 -> lane-dense last dim (multiple of 128)


# ----------------- kernel: 1x1 conv (VPU FMAs) + bias + SiLU -----------------
# x_ref : (1, DIM, THW)   one batch, channels x flattened (t, h, w)
# w_ref : (O4, DIM)       1x1 conv weight
# b_ref : (O4, 1)         conv bias as a column (single lane-broadcast init)
# o_ref : (1, O4, THW)    pre-shuffle activations, lane-dense on THW
def upsample_kernel(x_ref, w_ref, b_ref, o_ref):
    x = x_ref[0]                                   # (DIM, THW)
    w = w_ref[...]                                 # (O4, DIM)
    # K=4 contraction as unrolled VPU broadcast-FMAs; accumulator starts from
    # the broadcast bias (folds the bias add into the init).
    acc = b_ref[...] + w[:, 0:1] * x[0:1, :]       # (O4, THW) f32
    for c in range(1, DIM):                        # static unroll, DIM == 4
        acc = acc + w[:, c:c + 1] * x[c:c + 1, :]
    # SiLU: exp on the EUP, mul/div on the VPU (exact form keeps 1e-5 tolerance)
    y = acc * (1.0 / (1.0 + jnp.exp(-acc)))
    o_ref[0] = y.astype(o_ref.dtype)


# ----------------- wrapper ----------------------------------------------------
def spatial_upsample2x_forward(x, weight, bias):
    """x: (B, DIM, T, H, W); weight: (O4, DIM, 1, 1); bias: (O4,)."""
    x = x.astype(jnp.float32)
    w2d = weight.reshape(O4, DIM).astype(jnp.float32)
    b2d = bias.reshape(O4, 1).astype(jnp.float32)
    x_flat = x.reshape(B, DIM, THW)                # pure reshape (native layout)

    cost = pl.CostEstimate(
        flops=2 * B * O4 * DIM * THW,
        transcendentals=B * O4 * THW,
        bytes_accessed=4 * (B * DIM * THW + O4 * DIM + O4 + B * O4 * THW),
    )

    y = pl.pallas_call(
        upsample_kernel,
        out_shape=jax.ShapeDtypeStruct((B, O4, THW), jnp.float32),
        grid=(B,),
        in_specs=[
            pl.BlockSpec((1, DIM, THW), lambda b: (b, 0, 0)),
            pl.BlockSpec((O4, DIM), lambda b: (0, 0)),   # resident across steps
            pl.BlockSpec((O4, 1), lambda b: (0, 0)),     # resident across steps
        ],
        out_specs=pl.BlockSpec((1, O4, THW), lambda b: (b, 0, 0)),
        compiler_params=pltpu.CompilerParams(
            dimension_semantics=("parallel",)),          # one batch per TC on v7x
        cost_estimate=cost,
    )(x_flat, w2d, b2d)

    # pixel shuffle: 'b (c p1 p2) h w -> b c (h p1) (w p2)'
    # TODO(synk): left to XLA (single 256 KiB transpose fusion); see header note.
    out = y.reshape(B, DIM_OUT, 2, 2, T, H, W)
    out = out.transpose(0, 1, 4, 5, 2, 6, 3).reshape(B, DIM_OUT, T, 2 * H, 2 * W)
    return out


# ----------------- pure-JAX reference (for validation) ------------------------
def reference(x, weight, bias):
    x = x.astype(jnp.float32)
    w2d = weight.reshape(O4, DIM).astype(jnp.float32)
    # 1x1 conv over (b*t, c, h, w) == channel contraction on (b, c, t, h, w)
    y = jnp.einsum('bcthw,oc->bothw', x, w2d) + bias[None, :, None, None, None]
    y = y * (1.0 / (1.0 + jnp.exp(-y)))             # SiLU
    # 'n (c p1 p2) h w -> n c (h p1) (w p2)' with the (b, t) pack/unpack folded in
    y = y.reshape(B, DIM_OUT, 2, 2, T, H, W)
    y = y.transpose(0, 1, 4, 5, 2, 6, 3).reshape(B, DIM_OUT, T, 2 * H, 2 * W)
    return y


def _run_and_check(x, weight, bias):
    out = jax.block_until_ready(spatial_upsample2x_forward(x, weight, bias))
    ref = jax.block_until_ready(reference(x, weight, bias))
    assert out.shape == (B, DIM_OUT, T, 2 * H, 2 * W)
    np.testing.assert_allclose(np.asarray(out), np.asarray(ref),
                               rtol=1e-5, atol=1e-5)


if __name__ == "__main__":
    key = jax.random.PRNGKey(0)
    k_w, k_x, k_b = jax.random.split(key, 3)

    # replicate module init: kaiming_uniform on (dim_out, dim, 1, 1),
    # repeat 'o ... -> (o 4) ...', zero bias.
    fan_in = DIM
    bound = float(np.sqrt(2.0) * np.sqrt(3.0 / fan_in))
    w_base = jax.random.uniform(k_w, (DIM_OUT, DIM, 1, 1), jnp.float32,
                                minval=-bound, maxval=bound)
    weight = jnp.repeat(w_base, 4, axis=0)          # rows o*4..o*4+3 identical
    bias_zero = jnp.zeros((O4,), jnp.float32)
    x = jax.random.normal(k_x, (B, DIM, T, H, W), dtype=jnp.float32)

    # case 1: module-init (zero bias)
    _run_and_check(x, weight, bias_zero)

    # case 2: nonzero bias (exercises the broadcast bias-init path -- review concern)
    bias_rand = 0.1 * jax.random.normal(k_b, (O4,), dtype=jnp.float32)
    _run_and_check(x, weight, bias_rand)

    print("KERNEL_OK")
</pallas_src>

<mosaic_0001>
module attributes {stable_mosaic.version = 11 : i64} {
  func.func @upsample_kernel(%arg0: i32, %arg1: memref<1x4x2048xf32, #tpu.memory_space<vmem>>, %arg2: memref<16x4xf32, #tpu.memory_space<vmem>>, %arg3: memref<16x1xf32, #tpu.memory_space<vmem>>, %arg4: memref<1x16x2048xf32, #tpu.memory_space<vmem>>) attributes {dimension_semantics = [#tpu.dimension_semantics<parallel>], iteration_bounds = array<i64: 2>, scalar_prefetch = 0 : i64, scratch_operands = 0 : i64, tpu.core_type = #tpu.core_type<tc>, window_params = [{transform_indices = @transform_0, window_bounds = array<i64: 1, 4, 2048>}, {pipeline_mode = #tpu.pipeline_mode<synchronous>, transform_indices = @transform_1, window_bounds = array<i64: 16, 4>}, {pipeline_mode = #tpu.pipeline_mode<synchronous>, transform_indices = @transform_2, window_bounds = array<i64: 16, 1>}, {transform_indices = @transform_3, window_bounds = array<i64: 1, 16, 2048>}]} {
    %c0 = arith.constant 0 : index
    %c0_0 = arith.constant 0 : index
    %c0_1 = arith.constant 0 : index
    %0 = vector.load %arg1[%c0, %c0_0, %c0_1] : memref<1x4x2048xf32, #tpu.memory_space<vmem>>, vector<1x4x2048xf32>
    %1 = vector.shape_cast %0 : vector<1x4x2048xf32> to vector<4x2048xf32>
    %c0_2 = arith.constant 0 : index
    %c0_3 = arith.constant 0 : index
    %2 = vector.load %arg2[%c0_2, %c0_3] : memref<16x4xf32, #tpu.memory_space<vmem>>, vector<16x4xf32>
    %c0_4 = arith.constant 0 : index
    %c0_5 = arith.constant 0 : index
    %3 = vector.load %arg3[%c0_4, %c0_5] : memref<16x1xf32, #tpu.memory_space<vmem>>, vector<16x1xf32>
    %4 = vector.extract_strided_slice %2 {offsets = [0, 0], sizes = [16, 1], strides = [1, 1]} : vector<16x4xf32> to vector<16x1xf32>
    %5 = vector.extract_strided_slice %1 {offsets = [0, 0], sizes = [1, 2048], strides = [1, 1]} : vector<4x2048xf32> to vector<1x2048xf32>
    %6 = vector.broadcast %4 : vector<16x1xf32> to vector<16x2048xf32>
    %7 = vector.broadcast %5 : vector<1x2048xf32> to vector<16x2048xf32>
    %8 = arith.mulf %6, %7 : vector<16x2048xf32>
    %9 = vector.broadcast %3 : vector<16x1xf32> to vector<16x2048xf32>
    %10 = arith.addf %9, %8 : vector<16x2048xf32>
    %11 = vector.extract_strided_slice %2 {offsets = [0, 1], sizes = [16, 1], strides = [1, 1]} : vector<16x4xf32> to vector<16x1xf32>
    %12 = vector.extract_strided_slice %1 {offsets = [1, 0], sizes = [1, 2048], strides = [1, 1]} : vector<4x2048xf32> to vector<1x2048xf32>
    %13 = vector.broadcast %11 : vector<16x1xf32> to vector<16x2048xf32>
    %14 = vector.broadcast %12 : vector<1x2048xf32> to vector<16x2048xf32>
    %15 = arith.mulf %13, %14 : vector<16x2048xf32>
    %16 = arith.addf %10, %15 : vector<16x2048xf32>
    %17 = vector.extract_strided_slice %2 {offsets = [0, 2], sizes = [16, 1], strides = [1, 1]} : vector<16x4xf32> to vector<16x1xf32>
    %18 = vector.extract_strided_slice %1 {offsets = [2, 0], sizes = [1, 2048], strides = [1, 1]} : vector<4x2048xf32> to vector<1x2048xf32>
    %19 = vector.broadcast %17 : vector<16x1xf32> to vector<16x2048xf32>
    %20 = vector.broadcast %18 : vector<1x2048xf32> to vector<16x2048xf32>
    %21 = arith.mulf %19, %20 : vector<16x2048xf32>
    %22 = arith.addf %16, %21 : vector<16x2048xf32>
    %23 = vector.extract_strided_slice %2 {offsets = [0, 3], sizes = [16, 1], strides = [1, 1]} : vector<16x4xf32> to vector<16x1xf32>
    %24 = vector.extract_strided_slice %1 {offsets = [3, 0], sizes = [1, 2048], strides = [1, 1]} : vector<4x2048xf32> to vector<1x2048xf32>
    %25 = vector.broadcast %23 : vector<16x1xf32> to vector<16x2048xf32>
    %26 = vector.broadcast %24 : vector<1x2048xf32> to vector<16x2048xf32>
    %27 = arith.mulf %25, %26 : vector<16x2048xf32>
    %28 = arith.addf %22, %27 : vector<16x2048xf32>
    %cst = arith.constant 0.000000e+00 : f32
    %29 = vector.broadcast %cst : f32 to vector<16x2048xf32>
    %30 = arith.subf %29, %28 : vector<16x2048xf32>
    %31 = math.exp %30 : vector<16x2048xf32>
    %cst_6 = arith.constant 1.000000e+00 : f32
    %32 = vector.broadcast %cst_6 : f32 to vector<16x2048xf32>
    %33 = arith.addf %32, %31 : vector<16x2048xf32>
    %cst_7 = arith.constant 1.000000e+00 : f32
    %34 = vector.broadcast %cst_7 : f32 to vector<16x2048xf32>
    %35 = arith.divf %34, %33 : vector<16x2048xf32>
    %36 = arith.mulf %28, %35 : vector<16x2048xf32>
    %c0_8 = arith.constant 0 : index
    %c0_9 = arith.constant 0 : index
    %c0_10 = arith.constant 0 : index
    %37 = vector.load %arg4[%c0_8, %c0_9, %c0_10] : memref<1x16x2048xf32, #tpu.memory_space<vmem>>, vector<1x16x2048xf32>
    %38 = vector.shape_cast %37 : vector<1x16x2048xf32> to vector<16x2048xf32>
    %39 = vector.shape_cast %36 : vector<16x2048xf32> to vector<1x16x2048xf32>
    tpu.vector_store %arg4[%c0_8, %c0_9, %c0_10], %39 {strides = array<i32>} : memref<1x16x2048xf32, #tpu.memory_space<vmem>>, vector<1x16x2048xf32>,
    return
  }
  func.func @transform_0(%arg0: i32) -> (i32, i32, i32) {
    %c0_i32 = arith.constant 0 : i32
    %c0_i32_0 = arith.constant 0 : i32
    %c0_i32_1 = arith.constant 0 : i32
    return %arg0, %c0_i32, %c0_i32_0 : i32, i32, i32
  }
  func.func @transform_1(%arg0: i32) -> (i32, i32) {
    %c0_i32 = arith.constant 0 : i32
    %c0_i32_0 = arith.constant 0 : i32
    %c0_i32_1 = arith.constant 0 : i32
    return %c0_i32, %c0_i32_0 : i32, i32
  }
  func.func @transform_2(%arg0: i32) -> (i32, i32) {
    %c0_i32 = arith.constant 0 : i32
    %c0_i32_0 = arith.constant 0 : i32
    %c0_i32_1 = arith.constant 0 : i32
    return %c0_i32, %c0_i32_0 : i32, i32
  }
  func.func @transform_3(%arg0: i32) -> (i32, i32, i32) {
    %c0_i32 = arith.constant 0 : i32
    %c0_i32_0 = arith.constant 0 : i32
    %c0_i32_1 = arith.constant 0 : i32
    return %arg0, %c0_i32, %c0_i32_0 : i32, i32, i32
  }
}

</mosaic_0001>

<bundles_post_ra>
// kernel: tpu_custom_call.1
= control target key start
LH: loop header
LB: loop body
LE: loop exit
PB: predicated region body
PF: predicated region fallthrough
CT: control target
= control target key end

     0   :  { %8 = vsyncpa [#allocation3], 0  ;;  %s2902_s0 = inlined_call_operand.hbm [shape: f32[2,4,2048], index: 0, kind: input, shape index: {}]   ;;  %s2903_s1 = inlined_call_operand.vmem [shape: f32[16,4], index: 1, kind: input, shape index: {}]   ;;  %s2904_s2 = inlined_call_operand.vmem [shape: f32[16,1], index: 2, kind: input, shape index: {}]   ;;  %s2905_s3 = inlined_call_operand.hbm [shape: f32[2,16,2048], index: 3, kind: output, shape index: {}]  }
   0x1   :  { %10 = vsyncpa [#allocation3 + $0x1], 0 }
   0x2   :  { %11 = vsyncpa [#allocation4], 0 }
   0x3   :  { %13 = vsyncpa [#allocation4 + $0x1], 0  ;;  %s1756_s12 = smov 0   ;;  %s1758_s13 = smov 0  }
   0x4   :  { %s1760_s14 = smov 0   ;;  %s1762_s15 = smov 0  }
   0x5 LB: > { %s1777_s16 = sadd.s32 4294967295, %s1726_s15   ;;  %s1426_s17 = sadd.s32 4294967294, %s1726_s15   ;;  %s1726_s15 = sphi %s1762_s15, %s3100_s15   ;;  %s1722_s14 = sphi %s1760_s14, %s3099_s14   ;;  %s1718_s13 = sphi %s1758_s13, %s3098_s13   ;;  %s1714_s12 = sphi %s1756_s12, %s3097_s12  }
   0x6   : > { %s1781_s18 = sadd.s32 1, %s1726_s15   ;;  %s26_s19 = sadd.s32 1, %s1722_s14 }
   0x7   : > { %s23_s20 = ssub.s32 %s1726_s15, %s1781_s18  ;;  %p33_p0 = scmp.ne.s32.totalorder %s1722_s14, %s1718_s13 }
   0x8   : > { %p24_p1 = scmp.eq.s32.totalorder %s23_s20, 0  ;;  %p34_p2 = scmp.eq.s32.totalorder %s1726_s15, 0 }
   0x9   : > { %p39_p3 = scmp.ne.s32.totalorder %s1718_s13, %s1714_s12  ;;  %p40_p4 = scmp.eq.s32.totalorder %s1777_s16, 0 }
   0xa   : > { %s1793_s21 = scalar_select %p24_p1, %s1722_s14, %s26_s19  }
   0xb   : > { %p1795_p5 = por %p34_p2, %p33_p0  ;;  %p1799_p6 = por %p40_p4, %p39_p3 }
   0xc   : > { %p105_p7 = scmp.eq.s32.totalorder %s1777_s16, 1  ;;  %p111_p8 = scmp.eq.s32.totalorder %s1426_s17, 1 }
   0xd   : > { %p1454_p10 = scmp.lt.s32.totalorder %s1726_s15, 2  ;;  %s137_s26 = sand.u32 1, %s1722_s14  }
   0xe   : > { %p1806_p11 = por %p105_p7, %p33_p0  ;;  %p1810_p12 = por %p111_p8, %p39_p3 }
   0xf   : > { %s1440_s27 = sshll.u32 %s1726_s15, 10  ;;  %s1429_s28 = sshll.u32 %s137_s26, 6 }
  0x10   : > { %s2947_s24 = scalar_select %p1806_p11, 1, 0 }
  0x11   : > { %s2948_s25 = scalar_select %p1810_p12, 1, 0 }
  0x12   : > { %s1819_s4 = scalar_lea.hbm %s2902_s0, %s1440_s27  ;;  %s141_s5 = scalar_lea.vmem [#allocation2], %s1429_s28 }
  0x13   : > { %s149_s6 = sshll.u32 %s141_s5, 4  ;;  %p1823_p13 = pnand %p1454_p10, %p1795_p5  ;;  %s1827_s6 = int_to_ptr.vmem [resolvable:$true] %s149_s6 }
  0x14   : > { %s138_s8 = scalar_lea.sflag [#allocation3], %s137_s26  ;;  %s1630_s9 = scalar_lea.hbm %s1819_s4, 1024 }
  0x15   : > { %p1631_p2 = scmp.ne.s32.totalorder %s1819_s4, %s1630_s9  ;;  %p1632_p3 = pneg %p1823_p13 }
  0x16   : > { %s1635_s17 = scalar_lea.hbm %s2902_s0, 2048  ;;  %p1636_p5 = scmp.lt.u32.totalorder %s1819_s4, %s2902_s0 }
  0x17   : > { %p1633_p4 = pnand %p1632_p3, %p1631_p2  ;;  %p1637_p8 = scmp.lt.u32.totalorder %s1635_s17, %s1630_s9 }
  0x18   : > { %p1639_p9 = scmp.lt.u32.totalorder %s1630_s9, %s1819_s4 }
  0x19   : > { %p1634_p7 = pneg %p1633_p4  ;;  %p1638_p10 = por %p1637_p8, %p1636_p5 }
  0x1b   : > { %p1640_p0 = por %p1639_p9, %p1638_p10 }
  0x1d   : > { %p1641_p1 = pnand %p1640_p0, %p1634_p7 }
  0x1f   : > { %1644 = shalt.err (!%p1641_p1)
}
  0x20   : > { %s1645_s22 = scalar_lea.vmem %s1827_s6, 1024  ;;  %s1728_s26 = smov [#allocation2]  }
  0x21   : > { %p1646_p2 = scmp.ne.s32.totalorder %s1827_s6, %s1645_s22  ;;  %s1650_s27 = sshll.u32 %s1728_s26, 4  ;;  %s1651_s27 = int_to_ptr.vmem [resolvable:$false] %s1650_s27 }
  0x22   : > { %s1652_s28 = scalar_lea.vmem %s1651_s27, 2048  ;;  %p1653_p11 = scmp.lt.s32.totalorder %s1827_s6, %s1651_s27 }
  0x23   : > { %p1648_p4 = pnand %p1646_p2, %p1632_p3  ;;  %p1654_p5 = scmp.lt.s32.totalorder %s1652_s28, %s1645_s22 }
  0x25   : > { %p1649_p12 = pneg %p1648_p4  ;;  %p1655_p8 = por %p1654_p5, %p1653_p11 }
  0x27   : > { %p1656_p9 = pnand %p1655_p8, %p1649_p12 }
  0x29   : > { %1659 = shalt.err (!%p1656_p9)
}
  0x2a   : > { %1449 = dma.hbm_to_vmem [thread:$0]  (!%p1823_p13), %s1819_s4, 1024, %s1827_s6, %s138_s8  }
  0x2b   : > { %p2950_p0 = scmp.lt.s32.totalorder %s1726_s15, 3  ;;  %p2951_p1 = scmp.ge.s32.totalorder %s1726_s15, 1 }
  0x2d   : > { %p155_p3 = pnand %p2951_p1, %p2950_p0 }
  0x2f   : > { %158 = sbr.rel (%p155_p3) target bundleno = 345 (0x159), region = 32 }
  0x36   : > { %s1861_s29 = sand.u32 1, %s1718_s13  }
  0x37   : > { %s1433_s30 = sshll.u32 %s1861_s29, 6  ;;  %s161_s5 = scalar_lea.sflag [#allocation3], %s1861_s29 }
  0x38   : > { %s1865_s9 = scalar_lea.vmem [#allocation2], %s1433_s30 }
  0x39   : > { %1705 = dma.done.wait (%p1799_p6), %s161_s5, 1024  }
  0x3a   : > { %1707 = vsyncadd (%p1799_p6), %s161_s5, 4294966272  ;;  %v1729_v0 = vmov 0   ;;  %v197_v1 = vld [vmem:[%s2904_s2] sm:$0xff]  ;;  %v198_v3 = vld [vmem:[%s2904_s2 + $0x8] sm:$0xff]  ;;  %v1730_v5 = vmov 1   ;;  %v1731_v6 = vmov 2   ;;  %v217_v8 = vlaneseq }
  0x3b   : > { %1495 = vset.pattern.permute.xlu1 %v1729_v0  ;;  %1494 = vset.pattern.permute.xlu0 %v1729_v0  ;;  %v195_v2 = vld [vmem:[%s2903_s1] sm:$0xff]  ;;  %v196_v4 = vld [vmem:[%s2903_s1 + $0x8] sm:$0xff]  ;;  %v1732_v7 = vmov 3   ;;  %v1894_v14 = vld [vmem:[%s1865_s9 + $0x10] sm:$0xff]  ;;  %s1434_s19 = sshll.u32 %s1861_s29, 8  ;;  %s1441_s22 = sshll.u32 %s1777_s16, 12 }
  0x3c   : > { %395 = vperm.xlu1 %1495, %v197_v1   ;;  %201 = vperm.xlu0 %1494, %v195_v2   ;;  %v1883_v9 = vshrl.u32 %v217_v8, 7  ;;  %v1888_v12 = vld [vmem:[%s1865_s9] sm:$0xff]  ;;  %v1891_v13 = vld [vmem:[%s1865_s9 + $0x8] sm:$0xff]  ;;  %v1897_v15 = vld [vmem:[%s1865_s9 + $0x18] sm:$0xff]  ;;  %s2776_s20 = scalar_lea.vmem [#allocation5], %s1434_s19  ;;  %s2852_s16 = scalar_lea.hbm %s2905_s3, %s1441_s22 }
  0x3d   : > { %v1906_v18 = vld [vmem:[%s1865_s9 + $0x20] sm:$0xff]  ;;  %v1909_v19 = vld [vmem:[%s1865_s9 + $0x28] sm:$0xff]  ;;  %v1915_v21 = vld [vmem:[%s1865_s9 + $0x30] sm:$0xff]  ;;  %s1353_s26 = sshll.u32 %s2776_s20, 4  ;;  %s1340_s30 = scalar_lea.sflag [#allocation4], %s1861_s29  ;;  %s2854_s26 = int_to_ptr.vmem [resolvable:$true] %s1353_s26 }
  0x3e   : > { %v219_v10 = vsub.s32 0, %v1883_v9  ;;  %v223_v11 = vsub.s32 4, %v1883_v9  ;;  %v1900_v16 = vsub.s32 1, %v1883_v9  ;;  %v1903_v17 = vsub.s32 2, %v1883_v9  ;;  %v1918_v22 = vld [vmem:[%s1865_s9 + $0x38] sm:$0xff]  ;;  %s1660_s5 = scalar_lea.vmem %s2854_s26, 4096 }
  0x3f   : > { %v1912_v20 = vsub.s32 3, %v1883_v9  ;;  %v449_v45 = vsub.s32 5, %v1883_v9  ;;  %v1970_v56 = vsub.s32 6, %v1883_v9  ;;  %p1661_p6 = scmp.ne.s32.totalorder %s2854_s26, %s1660_s5  ;;  %p3094_p11 = scmp.ne.s32.totalorder %s2947_s24, 0 }
  0x40   : > { %400 = vperm.xlu1 %1495, %v198_v3   ;;  %206 = vperm.xlu0 %1494, %v196_v4   ;;  %v220_v23 = vrot.slane %v1888_v12, %v219_v10  ;;  %v224_v24 = vrot.slane %v1888_v12, %v223_v11  ;;  %v228_v25 = vrot.slane %v1891_v13, %v219_v10  ;;  %s1733_s9 = smov [#allocation5]  }
  0x41   : > { %v232_v26 = vrot.slane %v1891_v13, %v223_v11  ;;  %v236_v27 = vrot.slane %v1894_v14, %v219_v10  ;;  %v240_v28 = vrot.slane %v1894_v14, %v223_v11  ;;  %v244_v29 = vrot.slane %v1897_v15, %v219_v10  ;;  %p1662_p12 = pnand %p1661_p6, %p3094_p11  ;;  %s1664_s4 = sshll.u32 %s1733_s9, 4  ;;  %s1665_s4 = int_to_ptr.vmem [resolvable:$false] %s1664_s4 }
  0x42   : > { %v248_v30 = vrot.slane %v1897_v15, %v223_v11  ;;  %v252_v31 = vrot.slane %v1906_v18, %v219_v10  ;;  %v256_v32 = vrot.slane %v1906_v18, %v223_v11  ;;  %v260_v33 = vrot.slane %v1909_v19, %v219_v10  ;;  %s1666_s6 = scalar_lea.vmem %s1665_s4, 8192  ;;  %p1667_p7 = scmp.lt.s32.totalorder %s2854_s26, %s1665_s4 }
  0x43   : > { %v264_v34 = vrot.slane %v1909_v19, %v223_v11  ;;  %v268_v35 = vrot.slane %v1915_v21, %v219_v10  ;;  %v272_v36 = vrot.slane %v1915_v21, %v223_v11  ;;  %v276_v37 = vrot.slane %v1918_v22, %v219_v10  ;;  %p1663_p13 = pneg %p1662_p12  ;;  %p1668_p10 = scmp.lt.s32.totalorder %s1666_s6, %s1660_s5 }
  0x44   : > { %1497 = vset.pattern.permute.xlu1 %v1730_v5  ;;  %1496 = vset.pattern.permute.xlu0 %v1730_v5  ;;  %v280_v38 = vrot.slane %v1918_v22, %v223_v11  ;;  %v1936_v39 = vrot.slane %v220_v23, %v219_v10  ;;  %v1938_v40 = vrot.slane %v224_v24, %v219_v10 }
  0x45   : > { %440 = vperm.xlu1 %1497, %v196_v4   ;;  %436 = vperm.xlu0 %1496, %v195_v2   ;;  %v1940_v41 = vrot.slane %v228_v25, %v219_v10  ;;  %v1942_v42 = vrot.slane %v232_v26, %v219_v10  ;;  %v1944_v43 = vrot.slane %v236_v27, %v219_v10  ;;  %p1669_p2 = por %p1668_p10, %p1667_p7 }
  0x46   : > { %v1946_v44 = vrot.slane %v240_v28, %v219_v10  ;;  %v1949_v46 = vrot.slane %v244_v29, %v219_v10  ;;  %v1951_v47 = vrot.slane %v248_v30, %v219_v10  ;;  %v1953_v48 = vrot.slane %v252_v31, %v219_v10 }
  0x47   : > { %v1955_v49 = vrot.slane %v256_v32, %v219_v10  ;;  %v1957_v50 = vrot.slane %v260_v33, %v219_v10  ;;  %v1959_v51 = vrot.slane %v264_v34, %v219_v10  ;;  %v1961_v52 = vrot.slane %v268_v35, %v219_v10  ;;  %p1670_p4 = pnand %p1669_p2, %p1663_p13 }
  0x48   : > { %v1963_v53 = vrot.slane %v272_v36, %v219_v10  ;;  %v1965_v54 = vrot.slane %v276_v37, %v219_v10  ;;  %v1967_v55 = vrot.slane %v280_v38, %v219_v10  ;;  %v446_v57 = vrot.slane %v1888_v12, %v1900_v16 }
  0x49   : > { %1498 = vset.pattern.permute.xlu1 %v1731_v6  ;;  %1499 = vset.pattern.permute.xlu0 %v1731_v6  ;;  %v450_v58 = vrot.slane %v1888_v12, %v449_v45  ;;  %v454_v59 = vrot.slane %v1891_v13, %v1900_v16  ;;  %v458_v60 = vrot.slane %v1891_v13, %v449_v45 }
  0x4a   : > { %652 = vperm.xlu1 %1498, %v195_v2   ;;  %656 = vperm.xlu0 %1499, %v196_v4   ;;  %v462_v61 = vrot.slane %v1894_v14, %v1900_v16  ;;  %v466_v62 = vrot.slane %v1894_v14, %v449_v45  ;;  %v470_v63 = vrot.slane %v1897_v15, %v1900_v16 }
  0x4b   : > { %v474_v0 = vrot.slane %v1897_v15, %v449_v45  ;;  %v478_v1 = vrot.slane %v1906_v18, %v1900_v16  ;;  %v486_v3 = vrot.slane %v1909_v19, %v1900_v16  ;;  %v494_v5 = vrot.slane %v1915_v21, %v1900_v16 }
  0x4c   : > { %v498_v6 = vrot.slane %v1915_v21, %v449_v45  ;;  %v506_v8 = vrot.slane %v1918_v22, %v449_v45  ;;  %v1997_v10 = vrot.slane %v446_v57, %v1900_v16  ;;  %v2000_v11 = vrot.slane %v450_v58, %v1900_v16 }
  0x4d   : > { %v2003_v23 = vrot.slane %v454_v59, %v1900_v16  ;;  %v2006_v24 = vrot.slane %v458_v60, %v1900_v16  ;;  %v2009_v25 = vrot.slane %v462_v61, %v1900_v16  ;;  %v2012_v26 = vrot.slane %v466_v62, %v1900_v16 }
  0x4e   : > { %1500 = vset.pattern.permute.xlu1 %v1732_v7  ;;  %1501 = vset.pattern.permute.xlu0 %v1732_v7  ;;  %v502_v7 = vrot.slane %v1918_v22, %v1900_v16  ;;  %v2015_v27 = vrot.slane %v470_v63, %v1900_v16  ;;  %v2018_v28 = vrot.slane %v474_v0, %v1900_v16 }
  0x4f   : > { %868 = vperm.xlu1 %1500, %v195_v2   ;;  %v482_v2 = vrot.slane %v1906_v18, %v449_v45  ;;  %v2021_v29 = vrot.slane %v478_v1, %v1900_v16  ;;  %v2027_v31 = vrot.slane %v486_v3, %v1900_v16  ;;  %v2033_v33 = vrot.slane %v494_v5, %v1900_v16 }
  0x50   : > { %v2036_v34 = vrot.slane %v498_v6, %v1900_v16  ;;  %v2039_v35 = vrot.slane %v502_v7, %v1900_v16  ;;  %v2042_v36 = vrot.slane %v506_v8, %v1900_v16  ;;  %v662_v37 = vrot.slane %v1888_v12, %v1903_v17 }
  0x51   : > { %v2024_v30 = vrot.slane %v482_v2, %v1900_v16  ;;  %v666_v38 = vrot.slane %v1888_v12, %v1970_v56  ;;  %v674_v57 = vrot.slane %v1891_v13, %v1970_v56  ;;  %v678_v58 = vrot.slane %v1894_v14, %v1903_v17 }
  0x52   : > { %2952 = vst [vmem:[#allocation8_spill] sm:$0xff] %v2036_v34  ;;  %2953 = vst [vmem:[#allocation9_spill] sm:$0xff] %v2039_v35  ;;  %v682_v59 = vrot.slane %v1894_v14, %v1970_v56  ;;  %v690_v60 = vrot.slane %v1897_v15, %v1970_v56  ;;  %v694_v61 = vrot.slane %v1906_v18, %v1903_v17 }
  0x53   : > { %872 = vperm.xlu1 %1500, %v196_v4   ;;  %v490_v4 = vrot.slane %v1909_v19, %v449_v45  ;;  %2954 = vst [vmem:[#allocation10_spill] sm:$0xff] %v2042_v36  ;;  %v670_v45 = vrot.slane %v1891_v13, %v1903_v17  ;;  %v698_v62 = vrot.slane %v1906_v18, %v1970_v56  ;;  %v881_v36 = vsub.s32 7, %v1883_v9 }
  0x54   : > { %v702_v63 = vrot.slane %v1909_v19, %v1903_v17  ;;  %v706_v0 = vrot.slane %v1909_v19, %v1970_v56  ;;  %v710_v1 = vrot.slane %v1915_v21, %v1903_v17  ;;  %v714_v2 = vrot.slane %v1915_v21, %v1970_v56 }
  0x55   : > { %v2030_v32 = vrot.slane %v490_v4, %v1900_v16  ;;  %v686_v16 = vrot.slane %v1897_v15, %v1903_v17  ;;  %v718_v3 = vrot.slane %v1918_v22, %v1903_v17  ;;  %v722_v4 = vrot.slane %v1918_v22, %v1970_v56 }
  0x56   : > { %v2077_v5 = vrot.slane %v662_v37, %v1903_v17  ;;  %v2080_v6 = vrot.slane %v666_v38, %v1903_v17  ;;  %v2083_v7 = vrot.slane %v670_v45, %v1903_v17  ;;  %v2086_v8 = vrot.slane %v674_v57, %v1903_v17 }
  0x57   : > { %v2090_v35 = vrot.slane %v678_v58, %v1903_v17  ;;  %v2093_v34 = vrot.slane %v682_v59, %v1903_v17  ;;  %v2096_v56 = vrot.slane %v686_v16, %v1903_v17  ;;  %v2099_v37 = vrot.slane %v690_v60, %v1903_v17 }
  0x58   : > { %2955 = vst [vmem:[#allocation11_spill] sm:$0xff] %v2077_v5  ;;  %2956 = vst [vmem:[#allocation12_spill] sm:$0xff] %v2080_v6  ;;  %v2102_v38 = vrot.slane %v694_v61, %v1903_v17  ;;  %v2105_v45 = vrot.slane %v698_v62, %v1903_v17  ;;  %v2108_v9 = vrot.slane %v702_v63, %v1903_v17 }
  0x59   : > { %2957 = vst [vmem:[#allocation13_spill] sm:$0xff] %v2083_v7  ;;  %2958 = vst [vmem:[#allocation14_spill] sm:$0xff] %v2086_v8  ;;  %v2111_v57 = vrot.slane %v706_v0, %v1903_v17  ;;  %v2114_v58 = vrot.slane %v710_v1, %v1903_v17  ;;  %v2117_v59 = vrot.slane %v714_v2, %v1903_v17  ;;  %v2998_v8 = vld [vmem:[#allocation8_spill] sm:$0xff]  ;;  %v2999_v6 = vld [vmem:[#allocation9_spill] sm:$0xff] }
  0x5a   : > { %2959 = vst [vmem:[#allocation15_spill] sm:$0xff] %v2090_v35  ;;  %2960 = vst [vmem:[#allocation16_spill] sm:$0xff] %v2093_v34  ;;  %v2120_v16 = vrot.slane %v718_v3, %v1903_v17  ;;  %v2123_v60 = vrot.slane %v722_v4, %v1903_v17  ;;  %v878_v61 = vrot.slane %v1888_v12, %v1912_v20 }
  0x5b   : > { %2961 = vst [vmem:[#allocation17_spill] sm:$0xff] %v2096_v56  ;;  %2962 = vst [vmem:[#allocation18_spill] sm:$0xff] %v2099_v37  ;;  %v882_v62 = vrot.slane %v1888_v12, %v881_v36  ;;  %v886_v63 = vrot.slane %v1891_v13, %v1912_v20  ;;  %v890_v0 = vrot.slane %v1891_v13, %v881_v36 }
  0x5c   : > { %2963 = vst [vmem:[#allocation19_spill] sm:$0xff] %v2102_v38  ;;  %2964 = vst [vmem:[#allocation20_spill] sm:$0xff] %v2105_v45  ;;  %v894_v1 = vrot.slane %v1894_v14, %v1912_v20  ;;  %v898_v2 = vrot.slane %v1894_v14, %v881_v36  ;;  %v902_v3 = vrot.slane %v1897_v15, %v1912_v20 }
  0x5d   : > { %2965 = vst [vmem:[#allocation21_spill] sm:$0xff] %v2108_v9  ;;  %2966 = vst [vmem:[#allocation22_spill] sm:$0xff] %v2111_v57  ;;  %v906_v17 = vrot.slane %v1897_v15, %v881_v36  ;;  %v910_v4 = vrot.slane %v1906_v18, %v1912_v20  ;;  %v914_v12 = vrot.slane %v1906_v18, %v881_v36 }
  0x5e   : > { %2967 = vst [vmem:[#allocation23_spill] sm:$0xff] %v2114_v58  ;;  %2968 = vst [vmem:[#allocation24_spill] sm:$0xff] %v2117_v59  ;;  %v922_v13 = vrot.slane %v1909_v19, %v881_v36  ;;  %v926_v59 = vrot.slane %v1915_v21, %v1912_v20  ;;  %v930_v14 = vrot.slane %v1915_v21, %v881_v36 }
  0x5f   : > { %2969 = vst [vmem:[#allocation25_spill] sm:$0xff] %v2120_v16  ;;  %2970 = vst [vmem:[#allocation26_spill] sm:$0xff] %v2123_v60  ;;  %v918_v60 = vrot.slane %v1909_v19, %v1912_v20  ;;  %v934_v58 = vrot.slane %v1918_v22, %v1912_v20  ;;  %v938_v15 = vrot.slane %v1918_v22, %v881_v36 }
  0x60   : > { %v2150_v57 = vrot.slane %v878_v61, %v1912_v20  ;;  %v2153_v18 = vrot.slane %v882_v62, %v1912_v20  ;;  %v2156_v9 = vrot.slane %v886_v63, %v1912_v20  ;;  %v2159_v19 = vrot.slane %v890_v0, %v1912_v20 }
  0x61   : > { %v2162_v45 = vrot.slane %v894_v1, %v1912_v20  ;;  %v2165_v21 = vrot.slane %v898_v2, %v1912_v20  ;;  %v2168_v22 = vrot.slane %v902_v3, %v1912_v20  ;;  %v2171_v36 = vrot.slane %v906_v17, %v1912_v20 }
  0x62   : > { %2971 = vst [vmem:[#allocation27_spill] sm:$0xff] %v2150_v57  ;;  %2972 = vst [vmem:[#allocation28_spill] sm:$0xff] %v2153_v18  ;;  %v2174_v61 = vrot.slane %v910_v4, %v1912_v20  ;;  %v2177_v62 = vrot.slane %v914_v12, %v1912_v20  ;;  %v2180_v63 = vrot.slane %v918_v60, %v1912_v20 }
  0x63   : > { %2973 = vst [vmem:[#allocation29_spill] sm:$0xff] %v2156_v9  ;;  %2974 = vst [vmem:[#allocation30_spill] sm:$0xff] %v2159_v19  ;;  %v2183_v0 = vrot.slane %v922_v13, %v1912_v20  ;;  %v2186_v1 = vrot.slane %v926_v59, %v1912_v20  ;;  %v2189_v2 = vrot.slane %v930_v14, %v1912_v20 }
  0x64   : > { %2975 = vst [vmem:[#allocation31_spill] sm:$0xff] %v2162_v45  ;;  %2976 = vst [vmem:[#allocation32_spill] sm:$0xff] %v2165_v21  ;;  %v2192_v3 = vrot.slane %v934_v58, %v1912_v20  ;;  %v2195_v17 = vrot.slane %v938_v15, %v1912_v20 }
  0x65   : > { %2977 = vst [vmem:[#allocation33_spill] sm:$0xff] %v2168_v22  ;;  %2978 = vst [vmem:[#allocation34_spill] sm:$0xff] %v2171_v36 }
  0x66   : > { %2979 = vst [vmem:[#allocation35_spill] sm:$0xff] %v2174_v61  ;;  %2980 = vst [vmem:[#allocation36_spill] sm:$0xff] %v2177_v62 }
  0x67   : > { %2981 = vst [vmem:[#allocation37_spill] sm:$0xff] %v2180_v63  ;;  %2982 = vst [vmem:[#allocation38_spill] sm:$0xff] %v2183_v0 }
  0x68   : > { %2983 = vst [vmem:[#allocation39_spill] sm:$0xff] %v2186_v1  ;;  %2984 = vst [vmem:[#allocation40_spill] sm:$0xff] %v2189_v2 }
  0x69   : > { %2985 = vst [vmem:[#allocation41_spill] sm:$0xff] %v2192_v3  ;;  %2986 = vst [vmem:[#allocation42_spill] sm:$0xff] %v2195_v17 }
  0xbb   : > { %v202_v16 = vpop.permute.xlu0 %201  ;;  %v396_v19 = vpop.permute.xlu1 %395 }
  0xbc   : > { %v361_v4 = vmul.f32 %v1936_v39, %v202_v16  ;;  %v362_v60 = vmul.f32 %v1938_v40, %v202_v16  ;;  %v363_v12 = vmul.f32 %v1940_v41, %v202_v16  ;;  %v364_v13 = vmul.f32 %v1942_v42, %v202_v16 }
  0xbd   : > { %v365_v59 = vmul.f32 %v1944_v43, %v202_v16  ;;  %v366_v1 = vmul.f32 %v1946_v44, %v202_v16  ;;  %v367_v14 = vmul.f32 %v1949_v46, %v202_v16  ;;  %v368_v58 = vmul.f32 %v1951_v47, %v202_v16 }
  0xbe   : > { %v369_v20 = vmul.f32 %v1953_v48, %v202_v16  ;;  %v370_v15 = vmul.f32 %v1955_v49, %v202_v16  ;;  %v371_v17 = vmul.f32 %v1957_v50, %v202_v16  ;;  %v372_v2 = vmul.f32 %v1959_v51, %v202_v16 }
  0xbf   : > { %v207_v3 = vpop.permute.xlu0 %206  ;;  %v373_v0 = vmul.f32 %v1961_v52, %v202_v16  ;;  %v374_v63 = vmul.f32 %v1963_v53, %v202_v16  ;;  %v375_v62 = vmul.f32 %v1965_v54, %v202_v16  ;;  %v376_v61 = vmul.f32 %v1967_v55, %v202_v16 }
  0xc0   : > { %v377_v36 = vmul.f32 %v1936_v39, %v207_v3  ;;  %v378_v22 = vmul.f32 %v1938_v40, %v207_v3  ;;  %v379_v21 = vmul.f32 %v1940_v41, %v207_v3  ;;  %v380_v45 = vmul.f32 %v1942_v42, %v207_v3 }
  0xc1   : > { %v381_v9 = vmul.f32 %v1944_v43, %v207_v3  ;;  %v382_v18 = vmul.f32 %v1946_v44, %v207_v3  ;;  %v383_v57 = vmul.f32 %v1949_v46, %v207_v3  ;;  %v384_v38 = vmul.f32 %v1951_v47, %v207_v3 }
  0xc2   : > { %v385_v37 = vmul.f32 %v1953_v48, %v207_v3  ;;  %v386_v16 = vmul.f32 %v1955_v49, %v207_v3  ;;  %v387_v39 = vmul.f32 %v1957_v50, %v207_v3  ;;  %v388_v40 = vmul.f32 %v1959_v51, %v207_v3 }
  0xc3   : > { %v389_v41 = vmul.f32 %v1961_v52, %v207_v3  ;;  %v390_v42 = vmul.f32 %v1963_v53, %v207_v3  ;;  %v391_v43 = vmul.f32 %v1965_v54, %v207_v3  ;;  %v392_v44 = vmul.f32 %v1967_v55, %v207_v3 }
  0xc4   : > { %v2229_v56 = vadd.f32 %v396_v19, %v361_v4  ;;  %v2231_v46 = vadd.f32 %v396_v19, %v362_v60  ;;  %v2233_v47 = vadd.f32 %v396_v19, %v363_v12  ;;  %v2235_v48 = vadd.f32 %v396_v19, %v364_v13  ;;  %v401_v4 = vpop.permute.xlu1 %400 }
  0xc5   : > { %v2237_v49 = vadd.f32 %v396_v19, %v365_v59  ;;  %v2239_v50 = vadd.f32 %v396_v19, %v366_v1  ;;  %v2241_v51 = vadd.f32 %v396_v19, %v367_v14  ;;  %v2243_v52 = vadd.f32 %v396_v19, %v368_v58 }
  0xc6   : > { %v2245_v53 = vadd.f32 %v396_v19, %v369_v20  ;;  %v2247_v54 = vadd.f32 %v396_v19, %v370_v15  ;;  %v2249_v55 = vadd.f32 %v396_v19, %v371_v17  ;;  %v2251_v3 = vadd.f32 %v396_v19, %v372_v2  ;;  %v437_v17 = vpop.permute.xlu0 %436 }
  0xc7   : > { %v2253_v60 = vadd.f32 %v396_v19, %v373_v0  ;;  %v2255_v12 = vadd.f32 %v396_v19, %v374_v63  ;;  %v2257_v13 = vadd.f32 %v396_v19, %v375_v62  ;;  %v2259_v1 = vadd.f32 %v396_v19, %v376_v61 }
  0xc8   : > { %v2261_v59 = vadd.f32 %v401_v4, %v377_v36  ;;  %v2263_v14 = vadd.f32 %v401_v4, %v378_v22  ;;  %v2265_v58 = vadd.f32 %v401_v4, %v379_v21  ;;  %v2267_v20 = vadd.f32 %v401_v4, %v380_v45 }
  0xc9   : > { %v2269_v2 = vadd.f32 %v401_v4, %v381_v9  ;;  %v2271_v15 = vadd.f32 %v401_v4, %v382_v18  ;;  %v2273_v0 = vadd.f32 %v401_v4, %v383_v57  ;;  %v2275_v63 = vadd.f32 %v401_v4, %v384_v38 }
  0xca   : > { %v2277_v62 = vadd.f32 %v401_v4, %v385_v37  ;;  %v2279_v19 = vadd.f32 %v401_v4, %v386_v16  ;;  %v2281_v36 = vadd.f32 %v401_v4, %v387_v39  ;;  %v2283_v22 = vadd.f32 %v401_v4, %v388_v40  ;;  %v441_v16 = vpop.permute.xlu1 %440 }
  0xcb   : > { %2987 = vst [vmem:[#allocation43_spill] sm:$0xff] %v2271_v15  ;;  %2988 = vst [vmem:[#allocation44_spill] sm:$0xff] %v2273_v0  ;;  %v2285_v21 = vadd.f32 %v401_v4, %v389_v41  ;;  %v2287_v45 = vadd.f32 %v401_v4, %v390_v42  ;;  %v2289_v9 = vadd.f32 %v401_v4, %v391_v43 }
  0xcc   : > { %2989 = vst [vmem:[#allocation45_spill] sm:$0xff] %v2275_v63  ;;  %2990 = vst [vmem:[#allocation46_spill] sm:$0xff] %v2277_v62  ;;  %v2291_v18 = vadd.f32 %v401_v4, %v392_v44  ;;  %v587_v57 = vmul.f32 %v1997_v10, %v437_v17  ;;  %v588_v38 = vmul.f32 %v2000_v11, %v437_v17 }
  0xcd   : > { %2991 = vst [vmem:[#allocation47_spill] sm:$0xff] %v2279_v19  ;;  %2992 = vst [vmem:[#allocation48_spill] sm:$0xff] %v2281_v36  ;;  %v589_v37 = vmul.f32 %v2003_v23, %v437_v17  ;;  %v590_v61 = vmul.f32 %v2006_v24, %v437_v17  ;;  %v591_v39 = vmul.f32 %v2009_v25, %v437_v17 }
  0xce   : > { %2993 = vst [vmem:[#allocation49_spill] sm:$0xff] %v2283_v22  ;;  %2994 = vst [vmem:[#allocation50_spill] sm:$0xff] %v2285_v21  ;;  %v592_v40 = vmul.f32 %v2012_v26, %v437_v17  ;;  %v593_v41 = vmul.f32 %v2015_v27, %v437_v17  ;;  %v594_v42 = vmul.f32 %v2018_v28, %v437_v17 }
  0xcf   : > { %2995 = vst [vmem:[#allocation51_spill] sm:$0xff] %v2287_v45  ;;  %2996 = vst [vmem:[#allocation52_spill] sm:$0xff] %v2289_v9  ;;  %v595_v43 = vmul.f32 %v2021_v29, %v437_v17  ;;  %v596_v44 = vmul.f32 %v2024_v30, %v437_v17  ;;  %v597_v4 = vmul.f32 %v2027_v31, %v437_v17 }
  0xd0   : > { %2997 = vst [vmem:[#allocation53_spill] sm:$0xff] %v2291_v18  ;;  %v598_v34 = vmul.f32 %v2030_v32, %v437_v17  ;;  %v599_v35 = vmul.f32 %v2033_v33, %v437_v17  ;;  %v600_v7 = vmul.f32 %v2998_v8, %v437_v17  ;;  %v601_v5 = vmul.f32 %v2999_v6, %v437_v17  ;;  %v3000_v18 = vld [vmem:[#allocation10_spill] sm:$0xff] }
  0xd1   : > { %v602_v9 = vmul.f32 %v3000_v18, %v437_v17  ;;  %v603_v45 = vmul.f32 %v1997_v10, %v441_v16  ;;  %v604_v21 = vmul.f32 %v2000_v11, %v441_v16  ;;  %v605_v22 = vmul.f32 %v2003_v23, %v441_v16 }
  0xd2   : > { %v606_v36 = vmul.f32 %v2006_v24, %v441_v16  ;;  %v607_v19 = vmul.f32 %v2009_v25, %v441_v16  ;;  %v608_v62 = vmul.f32 %v2012_v26, %v441_v16  ;;  %v609_v63 = vmul.f32 %v2015_v27, %v441_v16 }
  0xd3   : > { %v610_v0 = vmul.f32 %v2018_v28, %v441_v16  ;;  %v611_v15 = vmul.f32 %v2021_v29, %v441_v16  ;;  %v612_v17 = vmul.f32 %v2024_v30, %v441_v16  ;;  %v613_v10 = vmul.f32 %v2027_v31, %v441_v16 }
  0xd4   : > { %v614_v11 = vmul.f32 %v2030_v32, %v441_v16  ;;  %v615_v23 = vmul.f32 %v2033_v33, %v441_v16  ;;  %v616_v24 = vmul.f32 %v2998_v8, %v441_v16  ;;  %v617_v25 = vmul.f32 %v2999_v6, %v441_v16 }
  0xd5   : > { %v618_v26 = vmul.f32 %v3000_v18, %v441_v16  ;;  %v2326_v27 = vadd.f32 %v587_v57, %v2229_v56  ;;  %v2329_v28 = vadd.f32 %v588_v38, %v2231_v46  ;;  %v2332_v29 = vadd.f32 %v589_v37, %v2233_v47  ;;  %v3023_v18 = vld [vmem:[#allocation11_spill] sm:$0xff]  ;;  %v3024_v38 = vld [vmem:[#allocation12_spill] sm:$0xff] }
  0xd6   : > { %v2335_v30 = vadd.f32 %v590_v61, %v2235_v48  ;;  %v2338_v31 = vadd.f32 %v591_v39, %v2237_v49  ;;  %v2341_v32 = vadd.f32 %v592_v40, %v2239_v50  ;;  %v2344_v33 = vadd.f32 %v593_v41, %v2241_v51  ;;  %v3025_v61 = vld [vmem:[#allocation13_spill] sm:$0xff]  ;;  %v3026_v39 = vld [vmem:[#allocation14_spill] sm:$0xff]  ;;  %v657_v41 = vpop.permute.xlu0 %656 }
  0xd7   : > { %v2347_v6 = vadd.f32 %v594_v42, %v2243_v52  ;;  %v2350_v8 = vadd.f32 %v595_v43, %v2245_v53  ;;  %v2353_v56 = vadd.f32 %v596_v44, %v2247_v54  ;;  %v2356_v46 = vadd.f32 %v597_v4, %v2249_v55  ;;  %v3027_v42 = vld [vmem:[#allocation15_spill] sm:$0xff]  ;;  %v3028_v44 = vld [vmem:[#allocation16_spill] sm:$0xff] }
  0xd8   : > { %v2359_v47 = vadd.f32 %v598_v34, %v2251_v3  ;;  %v2362_v48 = vadd.f32 %v599_v35, %v2253_v60  ;;  %v2365_v49 = vadd.f32 %v600_v7, %v2255_v12  ;;  %v2368_v50 = vadd.f32 %v601_v5, %v2257_v13  ;;  %v653_v7 = vpop.permute.xlu1 %652  ;;  %v3001_v5 = vld [vmem:[#allocation43_spill] sm:$0xff]  ;;  %v3003_v3 = vld [vmem:[#allocation44_spill] sm:$0xff]  ;;  %v3005_v12 = vld [vmem:[#allocation45_spill] sm:$0xff] }
  0xd9   : > { %v2371_v51 = vadd.f32 %v602_v9, %v2259_v1  ;;  %v2374_v52 = vadd.f32 %v603_v45, %v2261_v59  ;;  %v2377_v53 = vadd.f32 %v604_v21, %v2263_v14  ;;  %v2380_v34 = vadd.f32 %v605_v22, %v2265_v58  ;;  %v3007_v1 = vld [vmem:[#allocation46_spill] sm:$0xff]  ;;  %v3009_v14 = vld [vmem:[#allocation47_spill] sm:$0xff] }
  0xda   : > { %v2383_v35 = vadd.f32 %v606_v36, %v2267_v20  ;;  %v2386_v54 = vadd.f32 %v607_v19, %v2269_v2  ;;  %v2389_v55 = vadd.f32 %v608_v62, %v3001_v5  ;;  %v2392_v60 = vadd.f32 %v609_v63, %v3003_v3  ;;  %v3011_v20 = vld [vmem:[#allocation48_spill] sm:$0xff]  ;;  %v3013_v2 = vld [vmem:[#allocation49_spill] sm:$0xff]  ;;  %v3015_v62 = vld [vmem:[#allocation50_spill] sm:$0xff] }
  0xdb   : > { %v2395_v13 = vadd.f32 %v610_v0, %v3005_v12  ;;  %v2398_v59 = vadd.f32 %v611_v15, %v3007_v1  ;;  %v2401_v58 = vadd.f32 %v612_v17, %v3009_v14  ;;  %v2404_v36 = vadd.f32 %v613_v10, %v3011_v20  ;;  %v3017_v63 = vld [vmem:[#allocation51_spill] sm:$0xff]  ;;  %v3019_v0 = vld [vmem:[#allocation52_spill] sm:$0xff]  ;;  %v3021_v15 = vld [vmem:[#allocation53_spill] sm:$0xff] }
  0xdc   : > { %3002 = vst [vmem:[#allocation8_spill] sm:$0xff] %v2389_v55  ;;  %3004 = vst [vmem:[#allocation9_spill] sm:$0xff] %v2392_v60  ;;  %v2407_v19 = vadd.f32 %v614_v11, %v3013_v2  ;;  %v2410_v22 = vadd.f32 %v615_v23, %v3015_v62  ;;  %v2413_v21 = vadd.f32 %v616_v24, %v3017_v63  ;;  %v3029_v17 = vld [vmem:[#allocation17_spill] sm:$0xff]  ;;  %v3030_v11 = vld [vmem:[#allocation18_spill] sm:$0xff] }
  0xdd   : > { %3006 = vst [vmem:[#allocation10_spill] sm:$0xff] %v2395_v13  ;;  %3008 = vst [vmem:[#allocation43_spill] sm:$0xff] %v2398_v59  ;;  %v2416_v45 = vadd.f32 %v617_v25, %v3019_v0  ;;  %v2419_v9 = vadd.f32 %v618_v26, %v3021_v15  ;;  %v803_v57 = vmul.f32 %v3023_v18, %v653_v7  ;;  %v3031_v24 = vld [vmem:[#allocation19_spill] sm:$0xff]  ;;  %v3032_v26 = vld [vmem:[#allocation20_spill] sm:$0xff] }
  0xde   : > { %3010 = vst [vmem:[#allocation44_spill] sm:$0xff] %v2401_v58  ;;  %3012 = vst [vmem:[#allocation45_spill] sm:$0xff] %v2404_v36  ;;  %v804_v37 = vmul.f32 %v3024_v38, %v653_v7  ;;  %v805_v16 = vmul.f32 %v3025_v61, %v653_v7  ;;  %v806_v40 = vmul.f32 %v3026_v39, %v653_v7  ;;  %v3033_v3 = vld [vmem:[#allocation21_spill] sm:$0xff]  ;;  %v3034_v1 = vld [vmem:[#allocation22_spill] sm:$0xff] }
  0xdf   : > { %3014 = vst [vmem:[#allocation46_spill] sm:$0xff] %v2407_v19  ;;  %3016 = vst [vmem:[#allocation47_spill] sm:$0xff] %v2410_v22  ;;  %v807_v43 = vmul.f32 %v3027_v42, %v653_v7  ;;  %v808_v4 = vmul.f32 %v3028_v44, %v653_v7  ;;  %v809_v10 = vmul.f32 %v3029_v17, %v653_v7  ;;  %v3035_v20 = vld [vmem:[#allocation23_spill] sm:$0xff]  ;;  %v3036_v62 = vld [vmem:[#allocation24_spill] sm:$0xff] }
  0xe0   : > { %3018 = vst [vmem:[#allocation48_spill] sm:$0xff] %v2413_v21  ;;  %3020 = vst [vmem:[#allocation49_spill] sm:$0xff] %v2416_v45  ;;  %v810_v23 = vmul.f32 %v3030_v11, %v653_v7  ;;  %v811_v25 = vmul.f32 %v3031_v24, %v653_v7  ;;  %v812_v5 = vmul.f32 %v3032_v26, %v653_v7  ;;  %v3037_v0 = vld [vmem:[#allocation25_spill] sm:$0xff] }
  0xe1   : > { %3022 = vst [vmem:[#allocation50_spill] sm:$0xff] %v2419_v9  ;;  %v813_v12 = vmul.f32 %v3033_v3, %v653_v7  ;;  %v814_v14 = vmul.f32 %v3034_v1, %v653_v7  ;;  %v815_v2 = vmul.f32 %v3035_v20, %v653_v7  ;;  %v816_v63 = vmul.f32 %v3036_v62, %v653_v7  ;;  %v3038_v9 = vld [vmem:[#allocation26_spill] sm:$0xff] }
  0xe2   : > { %v817_v15 = vmul.f32 %v3037_v0, %v653_v7  ;;  %v818_v45 = vmul.f32 %v3038_v9, %v653_v7  ;;  %v819_v21 = vmul.f32 %v3023_v18, %v657_v41  ;;  %v820_v22 = vmul.f32 %v3024_v38, %v657_v41 }
  0xe3   : > { %v821_v19 = vmul.f32 %v3025_v61, %v657_v41  ;;  %v822_v36 = vmul.f32 %v3026_v39, %v657_v41  ;;  %v823_v58 = vmul.f32 %v3027_v42, %v657_v41  ;;  %v824_v59 = vmul.f32 %v3028_v44, %v657_v41 }
  0xe4   : > { %v825_v13 = vmul.f32 %v3029_v17, %v657_v41  ;;  %v826_v60 = vmul.f32 %v3030_v11, %v657_v41  ;;  %v827_v55 = vmul.f32 %v3031_v24, %v657_v41  ;;  %v828_v7 = vmul.f32 %v3032_v26, %v657_v41 }
  0xe5   : > { %v829_v18 = vmul.f32 %v3033_v3, %v657_v41  ;;  %v830_v38 = vmul.f32 %v3034_v1, %v657_v41  ;;  %v831_v61 = vmul.f32 %v3035_v20, %v657_v41  ;;  %v832_v39 = vmul.f32 %v3036_v62, %v657_v41 }
  0xe6   : > { %v833_v42 = vmul.f32 %v3037_v0, %v657_v41  ;;  %v834_v44 = vmul.f32 %v3038_v9, %v657_v41  ;;  %v835_v17 = vadd.f32 %v803_v57, %v2326_v27  ;;  %v836_v11 = vadd.f32 %v804_v37, %v2329_v28 }
  0xe7   : > { %v837_v24 = vadd.f32 %v805_v16, %v2332_v29  ;;  %v838_v26 = vadd.f32 %v806_v40, %v2335_v30  ;;  %v839_v3 = vadd.f32 %v807_v43, %v2338_v31  ;;  %v840_v1 = vadd.f32 %v808_v4, %v2341_v32  ;;  %v3061_v40 = vld [vmem:[#allocation27_spill] sm:$0xff]  ;;  %v3062_v43 = vld [vmem:[#allocation28_spill] sm:$0xff] }
  0xe8   : > { %v841_v20 = vadd.f32 %v809_v10, %v2344_v33  ;;  %v2461_v62 = vadd.f32 %v810_v23, %v2347_v6  ;;  %v2464_v0 = vadd.f32 %v811_v25, %v2350_v8  ;;  %v2467_v27 = vadd.f32 %v812_v5, %v2353_v56  ;;  %v869_v6 = vpop.permute.xlu1 %868  ;;  %v3063_v10 = vld [vmem:[#allocation29_spill] sm:$0xff]  ;;  %v3064_v25 = vld [vmem:[#allocation30_spill] sm:$0xff] }
  0xe9   : > { %v2470_v28 = vadd.f32 %v813_v12, %v2356_v46  ;;  %v2473_v29 = vadd.f32 %v814_v14, %v2359_v47  ;;  %v2476_v30 = vadd.f32 %v815_v2, %v2362_v48  ;;  %v2479_v31 = vadd.f32 %v816_v63, %v2365_v49  ;;  %v3039_v49 = vld [vmem:[#allocation8_spill] sm:$0xff]  ;;  %v3065_v14 = vld [vmem:[#allocation31_spill] sm:$0xff] }
  0xea   : > { %v2482_v32 = vadd.f32 %v817_v15, %v2368_v50  ;;  %v2485_v33 = vadd.f32 %v818_v45, %v2371_v51  ;;  %v2488_v8 = vadd.f32 %v819_v21, %v2374_v52  ;;  %v2491_v56 = vadd.f32 %v820_v22, %v2377_v53  ;;  %v3041_v51 = vld [vmem:[#allocation9_spill] sm:$0xff]  ;;  %v3043_v52 = vld [vmem:[#allocation10_spill] sm:$0xff]  ;;  %v3045_v53 = vld [vmem:[#allocation43_spill] sm:$0xff] }
  0xeb   : > { %v2494_v46 = vadd.f32 %v821_v19, %v2380_v34  ;;  %v2497_v47 = vadd.f32 %v822_v36, %v2383_v35  ;;  %v2500_v48 = vadd.f32 %v823_v58, %v2386_v54  ;;  %v2503_v50 = vadd.f32 %v824_v59, %v3039_v49  ;;  %v3047_v34 = vld [vmem:[#allocation44_spill] sm:$0xff]  ;;  %v3049_v35 = vld [vmem:[#allocation45_spill] sm:$0xff]  ;;  %v3051_v54 = vld [vmem:[#allocation46_spill] sm:$0xff] }
  0xec   : > { %v2506_v45 = vadd.f32 %v825_v13, %v3041_v51  ;;  %v2509_v21 = vadd.f32 %v826_v60, %v3043_v52  ;;  %v2512_v22 = vadd.f32 %v827_v55, %v3045_v53  ;;  %v2515_v19 = vadd.f32 %v828_v7, %v3047_v34  ;;  %v3053_v59 = vld [vmem:[#allocation47_spill] sm:$0xff]  ;;  %v3055_v13 = vld [vmem:[#allocation48_spill] sm:$0xff]  ;;  %v3057_v60 = vld [vmem:[#allocation49_spill] sm:$0xff]  ;;  %v873_v12 = vpop.permute.xlu1 %872 }
  0xed   : > { %3040 = vst [vmem:[#allocation51_spill] sm:$0xff] %v2503_v50  ;;  %v2518_v36 = vadd.f32 %v829_v18, %v3049_v35  ;;  %v2521_v58 = vadd.f32 %v830_v38, %v3051_v54  ;;  %v2524_v9 = vadd.f32 %v831_v61, %v3053_v59  ;;  %v2527_v57 = vadd.f32 %v832_v39, %v3055_v13  ;;  %v3059_v55 = vld [vmem:[#allocation50_spill] sm:$0xff]  ;;  %v3066_v63 = vld [vmem:[#allocation32_spill] sm:$0xff]  ;;  %v3067_v7 = vld [vmem:[#allocation33_spill] sm:$0xff] }
  0xee   : > { %3042 = vst [vmem:[#allocation52_spill] sm:$0xff] %v2506_v45  ;;  %3044 = vst [vmem:[#allocation53_spill] sm:$0xff] %v2509_v21  ;;  %v2530_v37 = vadd.f32 %v833_v42, %v3057_v60  ;;  %v2533_v16 = vadd.f32 %v834_v44, %v3059_v55  ;;  %v1019_v41 = vmul.f32 %v3061_v40, %v869_v6  ;;  %v3068_v38 = vld [vmem:[#allocation34_spill] sm:$0xff]  ;;  %v3069_v39 = vld [vmem:[#allocation35_spill] sm:$0xff] }
  0xef   : > { %3046 = vst [vmem:[#allocation11_spill] sm:$0xff] %v2512_v22  ;;  %3048 = vst [vmem:[#allocation12_spill] sm:$0xff] %v2515_v19  ;;  %v1020_v4 = vmul.f32 %v3062_v43, %v869_v6  ;;  %v1021_v23 = vmul.f32 %v3063_v10, %v869_v6  ;;  %v1022_v5 = vmul.f32 %v3064_v25, %v869_v6  ;;  %v3070_v44 = vld [vmem:[#allocation36_spill] sm:$0xff]  ;;  %v3071_v51 = vld [vmem:[#allocation37_spill] sm:$0xff] }
  0xf0   : > { %3050 = vst [vmem:[#allocation13_spill] sm:$0xff] %v2518_v36  ;;  %3052 = vst [vmem:[#allocation14_spill] sm:$0xff] %v2521_v58  ;;  %v1023_v2 = vmul.f32 %v3065_v14, %v869_v6  ;;  %v1024_v15 = vmul.f32 %v3066_v63, %v869_v6  ;;  %v1025_v18 = vmul.f32 %v3067_v7, %v869_v6  ;;  %v3072_v53 = vld [vmem:[#allocation38_spill] sm:$0xff]  ;;  %v3073_v35 = vld [vmem:[#allocation39_spill] sm:$0xff] }
  0xf1   : > { %3054 = vst [vmem:[#allocation15_spill] sm:$0xff] %v2524_v9  ;;  %3056 = vst [vmem:[#allocation16_spill] sm:$0xff] %v2527_v57  ;;  %v1026_v61 = vmul.f32 %v3068_v38, %v869_v6  ;;  %v1027_v42 = vmul.f32 %v3069_v39, %v869_v6  ;;  %v1028_v49 = vmul.f32 %v3070_v44, %v869_v6  ;;  %v3074_v59 = vld [vmem:[#allocation40_spill] sm:$0xff]  ;;  %v3075_v60 = vld [vmem:[#allocation41_spill] sm:$0xff] }
  0xf2   : > { %3058 = vst [vmem:[#allocation17_spill] sm:$0xff] %v2530_v37  ;;  %3060 = vst [vmem:[#allocation18_spill] sm:$0xff] %v2533_v16  ;;  %v1029_v52 = vmul.f32 %v3071_v51, %v869_v6  ;;  %v1030_v34 = vmul.f32 %v3072_v53, %v869_v6  ;;  %v1031_v54 = vmul.f32 %v3073_v35, %v869_v6  ;;  %v3076_v16 = vld [vmem:[#allocation42_spill] sm:$0xff] }
  0xf3   : > { %v1032_v13 = vmul.f32 %v3074_v59, %v869_v6  ;;  %v1033_v55 = vmul.f32 %v3075_v60, %v869_v6  ;;  %v1034_v37 = vmul.f32 %v3076_v16, %v869_v6  ;;  %v1035_v57 = vmul.f32 %v3061_v40, %v873_v12 }
  0xf4   : > { %v2552_v9 = vadd.f32 %v1019_v41, %v835_v17  ;;  %v2554_v58 = vadd.f32 %v1020_v4, %v836_v11  ;;  %v2556_v36 = vadd.f32 %v1021_v23, %v837_v24  ;;  %v1036_v19 = vmul.f32 %v3062_v43, %v873_v12 }
  0xf5   : > { %v1037_v22 = vmul.f32 %v3063_v10, %v873_v12  ;;  %v1038_v21 = vmul.f32 %v3064_v25, %v873_v12  ;;  %v2561_v45 = vadd.f32 %v1022_v5, %v838_v26  ;;  %v2564_v50 = vmul.f32 %v3065_v14, %v873_v12 }
  0xf6   : > { %v2567_v6 = vmul.f32 %v3066_v63, %v873_v12  ;;  %v2570_v17 = vmul.f32 %v3067_v7, %v873_v12  ;;  %v2572_v11 = vadd.f32 %v1023_v2, %v839_v3  ;;  %v2575_v24 = vmul.f32 %v3068_v38, %v873_v12 }
  0xf7   : > { %v2578_v40 = vmul.f32 %v3069_v39, %v873_v12  ;;  %v2580_v41 = vadd.f32 %v1024_v15, %v840_v1  ;;  %v2582_v26 = vadd.f32 %v1025_v18, %v841_v20  ;;  %v2585_v43 = vmul.f32 %v3070_v44, %v873_v12 }
  0xf8   : > { %v1083_v4 = vsub.f32 0.0, %v2552_v9  ;;  %v1084_v10 = vsub.f32 0.0, %v2554_v58  ;;  %v1085_v3 = vsub.f32 0.0, %v2556_v36  ;;  %v2591_v23 = vmul.f32 %v3071_v51, %v873_v12 }
  0xf9   : > { %v2594_v25 = vmul.f32 %v3072_v53, %v873_v12  ;;  %v2597_v1 = vadd.f32 %v1026_v61, %v2461_v62  ;;  %v1086_v20 = vsub.f32 0.0, %v2561_v45  ;;  %v2601_v5 = vmul.f32 %v3073_v35, %v873_v12 }
  0xfa   : > { %v2604_v14 = vmul.f32 %v3074_v59, %v873_v12  ;;  %v2607_v2 = vadd.f32 %v1027_v42, %v2464_v0  ;;  %v1087_v63 = vsub.f32 0.0, %v2572_v11  ;;  %v2611_v15 = vmul.f32 %v3075_v60, %v873_v12 }
  0xfb   : > { %v2614_v7 = vadd.f32 %v1028_v49, %v2467_v27  ;;  %v1088_v62 = vsub.f32 0.0, %v2580_v41  ;;  %v1089_v18 = vsub.f32 0.0, %v2582_v26  ;;  %v2619_v38 = vadd.f32 %v1029_v52, %v2470_v28 }
  0xfc   : > { %v1115_v61 = vmul.f32 1.442695, %v1083_v4  ;;  %v1117_v39 = vmul.f32 1.442695, %v1084_v10  ;;  %v1119_v44 = vmul.f32 1.442695, %v1085_v3  ;;  %v2622_v0 = vmul.f32 %v3076_v16, %v873_v12 }
  0xfd   : > { %v2625_v42 = vadd.f32 %v1030_v34, %v2473_v29  ;;  %v1090_v51 = vsub.f32 0.0, %v2597_v1  ;;  %v1121_v27 = vmul.f32 1.442695, %v1086_v20  ;;  %v2629_v49 = vadd.f32 %v1031_v54, %v2476_v30 }
  0xfe   : > { %v1091_v53 = vsub.f32 0.0, %v2607_v2  ;;  %1502 = vpow2.f32 %v1115_v61  ;;  %v1123_v28 = vmul.f32 1.442695, %v1087_v63  ;;  %v2633_v52 = vadd.f32 %v1032_v13, %v2479_v31 }
  0xff   : > { %v1092_v35 = vsub.f32 0.0, %v2614_v7  ;;  %1504 = vpow2.f32 %v1117_v39  ;;  %v1125_v16 = vmul.f32 1.442695, %v1088_v62  ;;  %v2637_v29 = vadd.f32 %v1033_v55, %v2482_v32  ;;  %v3078_v62 = vld [vmem:[#allocation52_spill] sm:$0xff]  ;;  %v3079_v39 = vld [vmem:[#allocation53_spill] sm:$0xff] }
 0x100   : > { %v1093_v12 = vsub.f32 0.0, %v2619_v38  ;;  %1506 = vpow2.f32 %v1119_v44  ;;  %v1127_v34 = vmul.f32 1.442695, %v1089_v18  ;;  %v2641_v30 = vadd.f32 %v1034_v37, %v2485_v33 }
 0x101   : > { %v1094_v54 = vsub.f32 0.0, %v2625_v42  ;;  %1508 = vpow2.f32 %v1121_v27  ;;  %v1129_v59 = vmul.f32 1.442695, %v1090_v51  ;;  %v2645_v31 = vadd.f32 %v1035_v57, %v2488_v8 }
 0x102   : > { %v1095_v13 = vsub.f32 0.0, %v2629_v49  ;;  %1510 = vpow2.f32 %v1123_v28  ;;  %v1131_v60 = vmul.f32 1.442695, %v1091_v53  ;;  %v2649_v32 = vadd.f32 %v1036_v19, %v2491_v56  ;;  %v3080_v53 = vld [vmem:[#allocation11_spill] sm:$0xff] }
 0x103   : > { %v1096_v55 = vsub.f32 0.0, %v2633_v52  ;;  %1512 = vpow2.f32 %v1125_v16  ;;  %v1133_v4 = vmul.f32 1.442695, %v1092_v35  ;;  %v2653_v33 = vadd.f32 %v1037_v22, %v2494_v46  ;;  %v3077_v22 = vld [vmem:[#allocation51_spill] sm:$0xff] }
 0x104   : > { %v1097_v37 = vsub.f32 0.0, %v2637_v29  ;;  %1514 = vpow2.f32 %v1127_v34  ;;  %v1135_v10 = vmul.f32 1.442695, %v1093_v12  ;;  %v2657_v8 = vadd.f32 %v1038_v21, %v2497_v47  ;;  %v3081_v12 = vld [vmem:[#allocation12_spill] sm:$0xff] }
 0x105   : > { %v1098_v57 = vsub.f32 0.0, %v2641_v30  ;;  %1516 = vpow2.f32 %v1129_v59  ;;  %v1137_v3 = vmul.f32 1.442695, %v1094_v54  ;;  %v2662_v56 = vadd.f32 %v2564_v50, %v2500_v48 }
 0x106   : > { %v1099_v19 = vsub.f32 0.0, %v2645_v31  ;;  %1518 = vpow2.f32 %v1131_v60  ;;  %v1139_v46 = vmul.f32 1.442695, %v1095_v13  ;;  %v2667_v20 = vadd.f32 %v2567_v6, %v3077_v22  ;;  %v3082_v13 = vld [vmem:[#allocation13_spill] sm:$0xff] }
 0x107   : > { %v1100_v63 = vsub.f32 0.0, %v2649_v32  ;;  %1520 = vpow2.f32 %v1133_v4  ;;  %v1141_v47 = vmul.f32 1.442695, %v1096_v55  ;;  %v2674_v18 = vadd.f32 %v2570_v17, %v3078_v62 }
 0x108   : > { %v2670_v21 = vpop.eup %1502  ;;  %v1101_v48 = vsub.f32 0.0, %v2653_v33  ;;  %1522 = vpow2.f32 %v1135_v10  ;;  %v1143_v50 = vmul.f32 1.442695, %v1097_v37  ;;  %v2681_v6 = vadd.f32 %v2575_v24, %v3079_v39  ;;  %v3083_v37 = vld [vmem:[#allocation14_spill] sm:$0xff]  ;;  %v3088_v39 = vld [vmem:[#allocation17_spill] sm:$0xff] }
 0x109   : > { %v2677_v61 = vpop.eup %1504  ;;  %v1102_v44 = vsub.f32 0.0, %v2657_v8  ;;  %1524 = vpow2.f32 %v1137_v3  ;;  %v1145_v51 = vmul.f32 1.442695, %v1098_v57  ;;  %v2688_v17 = vadd.f32 %v2578_v40, %v3080_v53 }
 0x10a   : > { %v2684_v27 = vpop.eup %1506  ;;  %v1103_v28 = vsub.f32 0.0, %v2662_v56  ;;  %1526 = vpow2.f32 %v1139_v46  ;;  %v1147_v35 = vmul.f32 1.442695, %v1099_v19  ;;  %v2695_v24 = vadd.f32 %v2585_v43, %v3081_v12  ;;  %v3084_v19 = vld [vmem:[#allocation15_spill] sm:$0xff] }
 0x10b   : > { %v2691_v16 = vpop.eup %1508  ;;  %v1104_v34 = vsub.f32 0.0, %v2667_v20  ;;  %1528 = vpow2.f32 %v1141_v47  ;;  %v1149_v54 = vmul.f32 1.442695, %v1100_v63  ;;  %v2702_v40 = vadd.f32 %v2591_v23, %v3082_v13  ;;  %v3086_v47 = vld [vmem:[#allocation16_spill] sm:$0xff] }
 0x10c   : > { %v2698_v59 = vpop.eup %1510  ;;  %v1105_v60 = vsub.f32 0.0, %v2674_v18  ;;  %1530 = vpow2.f32 %v1143_v50  ;;  %v1151_v55 = vmul.f32 1.442695, %v1101_v48  ;;  %v2709_v43 = vadd.f32 %v2594_v25, %v3083_v37 }
 0x10d   : > { %v2705_v4 = vpop.eup %1512  ;;  %v1106_v10 = vsub.f32 0.0, %v2681_v6  ;;  %1532 = vpow2.f32 %v1145_v51  ;;  %v1153_v57 = vmul.f32 1.442695, %v1102_v44  ;;  %v2716_v23 = vadd.f32 %v2601_v5, %v3084_v19 }
 0x10e   : > { %v2712_v3 = vpop.eup %1514  ;;  %v1107_v46 = vsub.f32 0.0, %v2688_v17  ;;  %1534 = vpow2.f32 %v1147_v35  ;;  %v1155_v22 = vmul.f32 1.442695, %v1103_v28  ;;  %v2723_v25 = vadd.f32 %v2604_v14, %v3086_v47  ;;  %v3090_v28 = vld [vmem:[#allocation18_spill] sm:$0xff] }
 0x10f   : > { %3085 = vst [vmem:[#allocation19_spill] sm:$0xff] %v2716_v23  ;;  %v2719_v63 = vpop.eup %1516  ;;  %v1108_v62 = vsub.f32 0.0, %v2695_v24  ;;  %1536 = vpow2.f32 %v1149_v54  ;;  %v1157_v48 = vmul.f32 1.442695, %v1104_v34  ;;  %v2728_v44 = vadd.f32 %v2611_v15, %v3088_v39 }
 0x110   : > { %3087 = vst [vmem:[#allocation20_spill] sm:$0xff] %v2723_v25  ;;  %v1519_v50 = vpop.eup %1518  ;;  %v1109_v5 = vsub.f32 0.0, %v2702_v40  ;;  %1538 = vpow2.f32 %v1151_v55  ;;  %v1159_v51 = vmul.f32 1.442695, %v1105_v60  ;;  %v2733_v35 = vadd.f32 %v2622_v0, %v3090_v28 }
 0x111   : > { %3089 = vst [vmem:[#allocation21_spill] sm:$0xff] %v2728_v44  ;;  %v1521_v53 = vpop.eup %1520  ;;  %v1110_v14 = vsub.f32 0.0, %v2709_v43  ;;  %1540 = vpow2.f32 %v1153_v57  ;;  %v1161_v12 = vmul.f32 1.442695, %v1106_v10  ;;  %v1111_v34 = vsub.f32 0.0, %v2716_v23 }
 0x112   : > { %v1523_v54 = vpop.eup %1522  ;;  %1542 = vpow2.f32 %v1155_v22  ;;  %v1163_v13 = vmul.f32 1.442695, %v1107_v46  ;;  %v1112_v37 = vsub.f32 0.0, %v2723_v25  ;;  %v1165_v55 = vmul.f32 1.442695, %v1108_v62 }
 0x113   : > { %v1525_v15 = vpop.eup %1524  ;;  %1544 = vpow2.f32 %v1157_v48  ;;  %v1113_v19 = vsub.f32 0.0, %v2728_v44  ;;  %v1167_v0 = vmul.f32 1.442695, %v1109_v5  ;;  %v1114_v39 = vsub.f32 0.0, %v2733_v35 }
 0x114   : > { %v1527_v60 = vpop.eup %1526  ;;  %1546 = vpow2.f32 %v1159_v51  ;;  %v1169_v10 = vmul.f32 1.442695, %v1110_v14  ;;  %v1171_v28 = vmul.f32 1.442695, %v1111_v34  ;;  %v1173_v46 = vmul.f32 1.442695, %v1112_v37 }
 0x115   : > { %v1529_v47 = vpop.eup %1528  ;;  %1548 = vpow2.f32 %v1161_v12  ;;  %v1175_v48 = vmul.f32 1.442695, %v1113_v19  ;;  %v1177_v25 = vmul.f32 1.442695, %v1114_v39  ;;  %v1179_v5 = vadd.f32 1.0, %v2670_v21 }
 0x116   : > { %v1531_v57 = vpop.eup %1530  ;;  %1550 = vpow2.f32 %v1163_v13  ;;  %v1180_v14 = vadd.f32 1.0, %v2677_v61  ;;  %v1181_v34 = vadd.f32 1.0, %v2684_v27  ;;  %v1182_v37 = vadd.f32 1.0, %v2691_v16 }
 0x117   : > { %v1533_v22 = vpop.eup %1532  ;;  %1552 = vpow2.f32 %v1165_v55  ;;  %v1183_v19 = vadd.f32 1.0, %v2698_v59  ;;  %v1185_v27 = vadd.f32 1.0, %v2712_v3  ;;  %v1186_v16 = vadd.f32 1.0, %v2719_v63 }
 0x118   : > { %v1535_v23 = vpop.eup %1534  ;;  %1554 = vpow2.f32 %v1167_v0  ;;  %v1184_v0 = vadd.f32 1.0, %v2705_v4  ;;  %v1187_v59 = vadd.f32 1.0, %v1519_v50  ;;  %v1190_v3 = vadd.f32 1.0, %v1525_v15 }
 0x119   : > { %v1537_v62 = vpop.eup %1536  ;;  %1556 = vpow2.f32 %v1169_v10  ;;  %v1191_v63 = vadd.f32 1.0, %v1527_v60  ;;  %v1192_v50 = vadd.f32 1.0, %v1529_v47 }
 0x11a   : > { %v1539_v44 = vpop.eup %1538  ;;  %1558 = vpow2.f32 %v1171_v28  ;;  %v1188_v28 = vadd.f32 1.0, %v1521_v53  ;;  %v1193_v53 = vadd.f32 1.0, %v1531_v57  ;;  %v1196_v60 = vadd.f32 1.0, %v1537_v62 }
 0x11b   : > { %v1541_v51 = vpop.eup %1540  ;;  %1560 = vpow2.f32 %v1173_v46  ;;  %v1189_v46 = vadd.f32 1.0, %v1523_v54  ;;  %v1197_v57 = vadd.f32 1.0, %v1539_v44 }
 0x11c   : > { %v2742_v12 = vpop.eup %1542  ;;  %1562 = vpow2.f32 %v1175_v48 }
 0x11d   : > { %v2745_v13 = vpop.eup %1544  ;;  %1564 = vpow2.f32 %v1177_v25  ;;  %v1199_v62 = vadd.f32 1.0, %v2742_v12 }
 0x11e   : > { %v2748_v55 = vpop.eup %1546  ;;  %1566 = vrcp.f32 %v1179_v5 }
 0x11f   : > { %v2751_v21 = vpop.eup %1548  ;;  %1568 = vrcp.f32 %v1180_v14 }
 0x120   : > { %v2754_v61 = vpop.eup %1550  ;;  %1570 = vrcp.f32 %v1181_v34 }
 0x121   : > { %v2757_v39 = vpop.eup %1552  ;;  %1572 = vrcp.f32 %v1182_v37 }
 0x122   : > { %v2760_v25 = vpop.eup %1554  ;;  %1574 = vrcp.f32 %v1183_v19  ;;  %v1194_v19 = vadd.f32 1.0, %v1533_v22 }
 0x123   : > { %v2762_v10 = vpop.eup %1556  ;;  %1576 = vrcp.f32 %v1184_v0 }
 0x124   : > { %v2764_v4 = vpop.eup %1558  ;;  %1578 = vrcp.f32 %v1185_v27  ;;  %v1195_v27 = vadd.f32 1.0, %v1535_v23  ;;  %v1198_v23 = vadd.f32 1.0, %v1541_v51 }
 0x125   : > { %v2766_v48 = vpop.eup %1560  ;;  %1580 = vrcp.f32 %v1186_v16 }
 0x126   : > { %v2769_v5 = vpop.eup %1562  ;;  %1582 = vrcp.f32 %v1187_v59 }
 0x127   : > { %v2771_v14 = vpop.eup %1564  ;;  %1584 = vrcp.f32 %v1188_v28 }
 0x128   : > { %v1567_v34 = vpop.eup %1566  ;;  %1586 = vrcp.f32 %v1189_v46 }
 0x129   : > { %v1569_v37 = vpop.eup %1568  ;;  %1588 = vrcp.f32 %v1190_v3  ;;  %v1275_v54 = vmul.f32 %v1567_v34, %v2552_v9 }
 0x12a   : > { %v1571_v0 = vpop.eup %1570  ;;  %1590 = vrcp.f32 %v1191_v63  ;;  %v1276_v15 = vmul.f32 %v1569_v37, %v2554_v58 }
 0x12b   : > { %v1573_v16 = vpop.eup %1572  ;;  %1592 = vrcp.f32 %v1192_v50  ;;  %v1277_v59 = vmul.f32 %v1571_v0, %v2556_v36  ;;  %1307 = vst [vmem:[%s2776_s20] sm:$0xff] %v1275_v54 }
 0x12c   : > { %v1575_v47 = vpop.eup %1574  ;;  %1594 = vrcp.f32 %v1193_v53  ;;  %v1278_v9 = vmul.f32 %v1573_v16, %v2561_v45  ;;  %1308 = vst [vmem:[%s2776_s20 + $0x8] sm:$0xff] %v1276_v15  ;;  %v1200_v45 = vadd.f32 1.0, %v2745_v13 }
 0x12d   : > { %v1577_v58 = vpop.eup %1576  ;;  %1596 = vrcp.f32 %v1194_v19  ;;  %v1279_v22 = vmul.f32 %v1575_v47, %v2572_v11  ;;  %1309 = vst [vmem:[%s2776_s20 + $0x10] sm:$0xff] %v1277_v59  ;;  %v1201_v11 = vadd.f32 1.0, %v2748_v55 }
 0x12e   : > { %v1579_v36 = vpop.eup %1578  ;;  %1598 = vrcp.f32 %v1195_v27  ;;  %v1280_v28 = vmul.f32 %v1577_v58, %v2580_v41  ;;  %1310 = vst [vmem:[%s2776_s20 + $0x18] sm:$0xff] %v1278_v9  ;;  %v1202_v41 = vadd.f32 1.0, %v2751_v21 }
 0x12f   : > { %v1581_v44 = vpop.eup %1580  ;;  %1600 = vrcp.f32 %v1196_v60  ;;  %v1281_v46 = vmul.f32 %v1579_v36, %v2582_v26  ;;  %1311 = vst [vmem:[%s2776_s20 + $0x20] sm:$0xff] %v1279_v22  ;;  %v1203_v26 = vadd.f32 1.0, %v2754_v61 }
 0x130   : > { %v1583_v51 = vpop.eup %1582  ;;  %1602 = vrcp.f32 %v1197_v57  ;;  %v1282_v3 = vmul.f32 %v1581_v44, %v2597_v1  ;;  %1312 = vst [vmem:[%s2776_s20 + $0x28] sm:$0xff] %v1280_v28  ;;  %v1204_v1 = vadd.f32 1.0, %v2757_v39  ;;  %v3093_v44 = vld [vmem:[#allocation21_spill] sm:$0xff] }
 0x131   : > { %v1585_v12 = vpop.eup %1584  ;;  %1604 = vrcp.f32 %v1198_v23  ;;  %v1283_v63 = vmul.f32 %v1583_v51, %v2607_v2  ;;  %1313 = vst [vmem:[%s2776_s20 + $0x30] sm:$0xff] %v1281_v46  ;;  %v1205_v2 = vadd.f32 1.0, %v2760_v25 }
 0x132   : > { %v1587_v13 = vpop.eup %1586  ;;  %1606 = vrcp.f32 %v1199_v62  ;;  %v1284_v50 = vmul.f32 %v1585_v12, %v2614_v7  ;;  %1314 = vst [vmem:[%s2776_s20 + $0x38] sm:$0xff] %v1282_v3  ;;  %v1206_v7 = vadd.f32 1.0, %v2762_v10  ;;  %v3092_v62 = vld [vmem:[#allocation20_spill] sm:$0xff] }
 0x133   : > { %v1589_v55 = vpop.eup %1588  ;;  %1608 = vrcp.f32 %v1200_v45  ;;  %v1285_v34 = vmul.f32 %v1587_v13, %v2619_v38  ;;  %1315 = vst [vmem:[%s2776_s20 + $0x40] sm:$0xff] %v1283_v63  ;;  %v1207_v38 = vadd.f32 1.0, %v2764_v4 }
 0x134   : > { %v1591_v21 = vpop.eup %1590  ;;  %1610 = vrcp.f32 %v1201_v11  ;;  %v1286_v53 = vmul.f32 %v1589_v55, %v2625_v42  ;;  %1316 = vst [vmem:[%s2776_s20 + $0x48] sm:$0xff] %v1284_v50  ;;  %v1208_v42 = vadd.f32 1.0, %v2766_v48 }
 0x135   : > { %v1593_v61 = vpop.eup %1592  ;;  %1612 = vrcp.f32 %v1202_v41  ;;  %v1287_v37 = vmul.f32 %v1591_v21, %v2629_v49  ;;  %1317 = vst [vmem:[%s2776_s20 + $0x50] sm:$0xff] %v1285_v34  ;;  %v1209_v49 = vadd.f32 1.0, %v2769_v5 }
 0x136   : > { %v1595_v39 = vpop.eup %1594  ;;  %1614 = vrcp.f32 %v1203_v26  ;;  %v1288_v19 = vmul.f32 %v1593_v61, %v2633_v52  ;;  %1318 = vst [vmem:[%s2776_s20 + $0x58] sm:$0xff] %v1286_v53  ;;  %v1210_v52 = vadd.f32 1.0, %v2771_v14 }
 0x137   : > { %v1597_v25 = vpop.eup %1596  ;;  %1616 = vrcp.f32 %v1204_v1  ;;  %v1289_v10 = vmul.f32 %v1595_v39, %v2637_v29  ;;  %1319 = vst [vmem:[%s2776_s20 + $0x60] sm:$0xff] %v1287_v37 }
 0x138   : > { %v1599_v54 = vpop.eup %1598  ;;  %1618 = vrcp.f32 %v1205_v2  ;;  %v1290_v4 = vmul.f32 %v1597_v25, %v2641_v30  ;;  %1320 = vst [vmem:[%s2776_s20 + $0x68] sm:$0xff] %v1288_v19 }
 0x139   : > { %v1601_v0 = vpop.eup %1600  ;;  %1620 = vrcp.f32 %v1206_v7  ;;  %v1291_v48 = vmul.f32 %v1599_v54, %v2645_v31  ;;  %1321 = vst [vmem:[%s2776_s20 + $0x70] sm:$0xff] %v1289_v10 }
 0x13a   : > { %v1603_v27 = vpop.eup %1602  ;;  %1622 = vrcp.f32 %v1207_v38  ;;  %v1292_v29 = vmul.f32 %v1601_v0, %v2649_v32  ;;  %1322 = vst [vmem:[%s2776_s20 + $0x78] sm:$0xff] %v1290_v4 }
 0x13b   : > { %v1605_v5 = vpop.eup %1604  ;;  %1624 = vrcp.f32 %v1208_v42  ;;  %v1293_v30 = vmul.f32 %v1603_v27, %v2653_v33  ;;  %1323 = vst [vmem:[%s2776_s20 + $0x80] sm:$0xff] %v1291_v48 }
 0x13c   : > { %v1607_v15 = vpop.eup %1606  ;;  %1626 = vrcp.f32 %v1209_v49  ;;  %v1294_v14 = vmul.f32 %v1605_v5, %v2657_v8  ;;  %1324 = vst [vmem:[%s2776_s20 + $0x88] sm:$0xff] %v1292_v29 }
 0x13d   : > { %v1609_v31 = vpop.eup %1608  ;;  %1628 = vrcp.f32 %v1210_v52  ;;  %v1295_v16 = vmul.f32 %v1607_v15, %v2662_v56  ;;  %1325 = vst [vmem:[%s2776_s20 + $0x90] sm:$0xff] %v1293_v30 }
 0x13e   : > { %v1611_v32 = vpop.eup %1610  ;;  %v1296_v60 = vmul.f32 %v1609_v31, %v2667_v20  ;;  %1326 = vst [vmem:[%s2776_s20 + $0x98] sm:$0xff] %v1294_v14 }
 0x13f   : > { %v1613_v33 = vpop.eup %1612  ;;  %v1297_v59 = vmul.f32 %v1611_v32, %v2674_v18  ;;  %1327 = vst [vmem:[%s2776_s20 + $0xa0] sm:$0xff] %v1295_v16 }
 0x140   : > { %v1615_v8 = vpop.eup %1614  ;;  %v1298_v47 = vmul.f32 %v1613_v33, %v2681_v6  ;;  %1328 = vst [vmem:[%s2776_s20 + $0xa8] sm:$0xff] %v1296_v60 }
 0x141   : > { %v1617_v57 = vpop.eup %1616  ;;  %v1299_v56 = vmul.f32 %v1615_v8, %v2688_v17  ;;  %1329 = vst [vmem:[%s2776_s20 + $0xb0] sm:$0xff] %v1297_v59  ;;  %v3091_v17 = vld [vmem:[#allocation19_spill] sm:$0xff] }
 0x142   : > { %v1619_v9 = vpop.eup %1618  ;;  %v1300_v20 = vmul.f32 %v1617_v57, %v2695_v24  ;;  %1330 = vst [vmem:[%s2776_s20 + $0xb8] sm:$0xff] %v1298_v47 }
 0x143   : > { %v1621_v58 = vpop.eup %1620  ;;  %v1301_v18 = vmul.f32 %v1619_v9, %v2702_v40  ;;  %1331 = vst [vmem:[%s2776_s20 + $0xc0] sm:$0xff] %v1299_v56 }
 0x144   : > { %v1623_v23 = vpop.eup %1622  ;;  %v1302_v22 = vmul.f32 %v1621_v58, %v2709_v43  ;;  %1332 = vst [vmem:[%s2776_s20 + $0xc8] sm:$0xff] %v1300_v20 }
 0x145   : > { %v1625_v6 = vpop.eup %1624  ;;  %v1303_v36 = vmul.f32 %v1623_v23, %v3091_v17  ;;  %1333 = vst [vmem:[%s2776_s20 + $0xd0] sm:$0xff] %v1301_v18 }
 0x146   : > { %v1627_v24 = vpop.eup %1626  ;;  %v1304_v28 = vmul.f32 %v1625_v6, %v3092_v62  ;;  %1334 = vst [vmem:[%s2776_s20 + $0xd8] sm:$0xff] %v1302_v22 }
 0x147   : > { %v1629_v40 = vpop.eup %1628  ;;  %v1305_v45 = vmul.f32 %v1627_v24, %v3093_v44  ;;  %1335 = vst [vmem:[%s2776_s20 + $0xe0] sm:$0xff] %v1303_v36 }
 0x148   : > { %v1306_v43 = vmul.f32 %v1629_v40, %v2733_v35  ;;  %1336 = vst [vmem:[%s2776_s20 + $0xe8] sm:$0xff] %v1304_v28 }
 0x149   : > { %1337 = vst [vmem:[%s2776_s20 + $0xf0] sm:$0xff] %v1305_v45 }
 0x14a   : > { %1338 = vst [vmem:[%s2776_s20 + $0xf8] sm:$0xff] %v1306_v43 }
 0x14b   : > { %1673 = shalt.err (!%p1670_p4)
}
 0x14c   : > { %s1674_s7 = scalar_lea.hbm %s2852_s16, 4096  ;;  %s1678_s11 = scalar_lea.hbm %s2905_s3, 8192 }
 0x14d   : > { %p1675_p5 = scmp.ne.s32.totalorder %s2852_s16, %s1674_s7  ;;  %p1679_p0 = scmp.lt.u32.totalorder %s2852_s16, %s2905_s3 }
 0x14e   : > { %p1680_p1 = scmp.lt.u32.totalorder %s1678_s11, %s1674_s7  ;;  %p1682_p6 = scmp.lt.u32.totalorder %s1674_s7, %s2852_s16 }
 0x14f   : > { %p1676_p8 = pnand %p1675_p5, %p3094_p11 }
 0x150   : > { %p1681_p3 = por %p1680_p1, %p1679_p0 }
 0x151   : > { %p1677_p9 = pneg %p1676_p8 }
 0x152   : > { %p1683_p12 = por %p1682_p6, %p1681_p3 }
 0x154   : > { %p1684_p13 = pnand %p1683_p12, %p1677_p9 }
 0x156   : > { %1687 = shalt.err (!%p1684_p13)
}
 0x157   : > { %s1734_s19 = smov 2048   ;;  %s1735_s20 = smov 128  }
 0x158   : > { %1444 = dma.vmem_to_hbm [thread:$0]  (%p3094_p11), %s2854_s26, 4096, %s2852_s16, %s1340_s30, %s1734_s19, %s1734_s19, %s1735_s20  }
 0x159 PF: > { %s1368_s22 = sand.u32 1, %s1714_s12   ;;  %p3095_p7 = scmp.ne.s32.totalorder %s2948_s25, 0 }
 0x15a   : > { %p3096_p10 = scmp.ge.s32.totalorder %s1726_s15, 2  ;;  %s1369_s27 = scalar_lea.sflag [#allocation4], %s1368_s22 }
 0x15c   : > { %p1451_p2 = pnand %p3096_p10, %p3095_p7 }
 0x15e   : > { %1709 = dma.done.wait (!%p1451_p2), %s1369_s27, 4096  }
 0x15f   : > { %1711 = vsyncadd (!%p1451_p2), %s1369_s27, 4294963200  ;;  %p16_p4 = scmp.ge.s32.totalorder %s1781_s18, 4   ;;  %s3097_s12 = smov %s1718_s13 }
 0x160   : > { %s3098_s13 = smov %s1722_s14  ;;  %s3099_s14 = smov %s1793_s21 }
 0x161   : > { %s3100_s15 = smov %s1781_s18  ;;  %18 = sbr.rel (!%p16_p4) target bundleno = 5 (0x5), region = 77 }
 0x168   :  { %1374 = vsyncpa [#allocation3], 1 }
 0x169   :  { %1376 = vsyncpa [#allocation3 + $0x1], 1 }
 0x16a   :  { %1377 = vsyncpa [#allocation4], 1 }
 0x16b   :  { %1379 = vsyncpa [#allocation4 + $0x1], 1 }

</bundles_post_ra>
